<compile_context>
chip_gen: v6e
topology: v6e:2x2x1
jax: 0.10.0
libtpu: 0.0.40
codegen_flags: <defaults>
</compile_context>

<pallas_src>
import functools

import jax
import jax.numpy as jnp
from jax import lax
from jax.experimental import pallas as pl
from jax.experimental.pallas import tpu as pltpu

SMOOTH = 1.0
_LANES = 128
_MAX_BLOCK_ROWS = 2048   # 2048*128*4B = 1 MiB per input per block (f32)
_NUM_CORE_SLICES = 2     # leading "parallel" grid axis (both TCs on v7x)


def _in_index_map(c, i, *, blocks_per_core, n_blocks):
    # Clamp so core-slices whose logical block range runs past the array still
    # issue in-bounds DMAs; their contribution is zeroed by the row mask.
    return (jnp.minimum(c * blocks_per_core + i, n_blocks - 1), 0)


def _dice_bce_partial_kernel(p_ref, t_ref, o_ref,
                             acc_inter, acc_psum, acc_bce,
                             *, block_rows, blocks_per_core, valid_rows,
                             needs_mask):
    """Accumulate (8,128) vector partials of [p*t, p+t, bce] per core-slice."""
    c = pl.program_id(0)
    i = pl.program_id(1)

    @pl.when(i == 0)
    def _():
        acc_inter[...] = jnp.zeros_like(acc_inter)
        acc_psum[...] = jnp.zeros_like(acc_psum)
        acc_bce[...] = jnp.zeros_like(acc_bce)

    p = p_ref[...].astype(jnp.float32)
    t = t_ref[...].astype(jnp.float32)

    pt = p * t
    psum = p + t
    # BCE elementwise term, log terms clamped at -100 (torch.nn.BCELoss).
    log_p = jnp.maximum(jnp.log(p), -100.0)
    log_1mp = jnp.maximum(jnp.log(1.0 - p), -100.0)
    bce = -(log_1mp + t * (log_p - log_1mp))

    def fold(x):
        # (block_rows, 128) -> (8, 128) partial sum; pure VPU vreg adds, no
        # accumulator-sized load/store traffic.
        return jnp.sum(x.reshape(block_rows // 8, 8, _LANES), axis=0)

    if needs_mask:
        gblock = c * blocks_per_core + i
        block_is_partial = (gblock + 1) * block_rows > valid_rows

        @pl.when(jnp.logical_not(block_is_partial))
        def _():
            acc_inter[...] += fold(pt)
            acc_psum[...] += fold(psum)
            acc_bce[...] += fold(bce)

        @pl.when(block_is_partial)
        def _():
            # Boundary block: rows past the array hold undefined data (logs may
            # be NaN/Inf).  Mask BEFORE folding -- jnp.where/select does not
            # propagate NaN/Inf from the unselected operand.
            row_ids = gblock * block_rows + lax.broadcasted_iota(
                jnp.int32, (block_rows, _LANES), 0)
            valid = row_ids < valid_rows
            zero = jnp.zeros_like(pt)
            acc_inter[...] += fold(jnp.where(valid, pt, zero))
            acc_psum[...] += fold(jnp.where(valid, psum, zero))
            acc_bce[...] += fold(jnp.where(valid, bce, zero))
    else:
        acc_inter[...] += fold(pt)
        acc_psum[...] += fold(psum)
        acc_bce[...] += fold(bce)

    @pl.when(i == pl.num_programs(1) - 1)
    def _():
        o_ref[0, 0, :, :] = acc_inter[...]
        o_ref[0, 1, :, :] = acc_psum[...]
        o_ref[0, 2, :, :] = acc_bce[...]


def _partials_jax(p, t):
    """Plain-JAX partial sums [p*t, p+t, bce] for the (tiny) ragged tail."""
    p = p.astype(jnp.float32)
    t = t.astype(jnp.float32)
    log_p = jnp.maximum(jnp.log(p), -100.0)
    log_1mp = jnp.maximum(jnp.log(1.0 - p), -100.0)
    bce = -(log_1mp + t * (log_p - log_1mp))
    return jnp.sum(p * t), jnp.sum(p + t), jnp.sum(bce)


def dice_bce_loss(predict, target):
    """JAX/Pallas equivalent of DiceBCELoss().forward(predict, target)."""
    assert predict.shape == target.shape
    n_total = predict.size

    # Keep kernel tiling assumptions (8-row sublane alignment) dtype-safe.
    predict = predict.astype(jnp.float32)
    target = target.astype(jnp.float32)

    p_flat = predict.reshape(-1)
    t_flat = target.reshape(-1)

    rows_total = n_total // _LANES
    main_rows = (rows_total // 8) * 8          # sublane-aligned prefix rows
    n_main = main_rows * _LANES

    if main_rows == 0:
        # Too small for even one (8, 128) tile: reduce entirely in JAX.
        inter, psum, bce_sum = _partials_jax(p_flat, t_flat)
    else:
        if n_main != n_total:
            # Rare (n_total not a multiple of 1024); the prefix slice
            # materializes a copy only in this case.
            p_main, t_main = p_flat[:n_main], t_flat[:n_main]
        else:
            p_main, t_main = p_flat, t_flat
        p2d = p_main.reshape(main_rows, _LANES)
        t2d = t_main.reshape(main_rows, _LANES)

        block_rows = min(_MAX_BLOCK_ROWS, main_rows)   # multiple of 8
        n_blocks = pl.cdiv(main_rows, block_rows)
        # Only split across core-slices when there are >= 2 blocks (otherwise
        # the duplicate fully-masked block would just waste a single-TC chip).
        num_cores = _NUM_CORE_SLICES if n_blocks >= 2 else 1
        blocks_per_core = pl.cdiv(n_blocks, num_cores)
        needs_mask = (num_cores * blocks_per_core * block_rows) != main_rows

        kernel = functools.partial(
            _dice_bce_partial_kernel,
            block_rows=block_rows,
            blocks_per_core=blocks_per_core,
            valid_rows=main_rows,
            needs_mask=needs_mask,
        )
        in_map = functools.partial(
            _in_index_map, blocks_per_core=blocks_per_core, n_blocks=n_blocks)

        partials = pl.pallas_call(
            kernel,
            out_shape=jax.ShapeDtypeStruct(
                (num_cores, 3, 8, _LANES), jnp.float32),
            grid_spec=pltpu.PrefetchScalarGridSpec(
                num_scalar_prefetch=0,
                grid=(num_cores, blocks_per_core),
                in_specs=[
                    pl.BlockSpec((block_rows, _LANES), in_map),
                    pl.BlockSpec((block_rows, _LANES), in_map),
                ],
                out_specs=pl.BlockSpec(
                    (1, 3, 8, _LANES), lambda c, i: (c, 0, 0, 0)),
                scratch_shapes=[
                    pltpu.VMEM((8, _LANES), jnp.float32) for _ in range(3)
                ],
            ),
            compiler_params=pltpu.CompilerParams(
                dimension_semantics=("parallel", "arbitrary"),
            ),
        )(p2d, t2d)

        sums = jnp.sum(partials, axis=(0, 2, 3))   # (3,) tiny reduction in XLA
        inter, psum, bce_sum = sums[0], sums[1], sums[2]

        if n_main != n_total:
            ti, tp, tb = _partials_jax(p_flat[n_main:], t_flat[n_main:])
            inter = inter + ti
            psum = psum + tp
            bce_sum = bce_sum + tb

    dice = 1.0 - (2.0 * inter + SMOOTH) / (psum + SMOOTH)
    # Reciprocal computed in Python double then rounded once to f32.
    bce_mean = bce_sum * jnp.float32(1.0 / n_total)
    return dice + bce_mean


def _reference(predict, target):
    p = predict.reshape(-1).astype(jnp.float32)
    t = target.reshape(-1).astype(jnp.float32)
    inter = jnp.sum(p * t)
    dice = 1.0 - (2.0 * inter + SMOOTH) / (jnp.sum(p) + jnp.sum(t) + SMOOTH)
    log_p = jnp.maximum(jnp.log(p), -100.0)
    log_1mp = jnp.maximum(jnp.log(1.0 - p), -100.0)
    bce = jnp.mean(-(t * log_p + (1.0 - t) * log_1mp))
    return dice + bce


if __name__ == "__main__":
    key = jax.random.PRNGKey(0)
    loss_fn = jax.jit(dice_bce_loss)

    def _make(shape, k):
        k_p, k_t = jax.random.split(k)
        # predict must be probabilities in (0, 1) for BCELoss.
        pred = jax.nn.sigmoid(jax.random.normal(k_p, shape, dtype=jnp.float32))
        targ = jax.random.bernoulli(k_t, 0.5, shape).astype(jnp.float32)
        return pred, targ

    k0, k1, k2 = jax.random.split(key, 3)

    # Main small NCHW segmentation-style case.
    predict, target = _make((2, 4, 16, 16), k0)
    loss = jax.block_until_ready(loss_fn(predict, target))
    ref = _reference(predict, target)
    assert jnp.allclose(loss, ref, rtol=1e-5, atol=1e-5), (loss, ref)

    # Unaligned element count -> exercises the ragged JAX tail path.
    predict, target = _make((2, 4, 16, 17), k1)
    loss = jax.block_until_ready(loss_fn(predict, target))
    ref = _reference(predict, target)
    assert jnp.allclose(loss, ref, rtol=1e-5, atol=1e-5), (loss, ref)

    # Multi-block case -> exercises two core-slices + boundary-block masking.
    predict, target = _make((4, 9, 128, 128), k2)
    loss = jax.block_until_ready(loss_fn(predict, target))
    ref = _reference(predict, target)
    assert jnp.allclose(loss, ref, rtol=1e-4, atol=1e-4), (loss, ref)

    print("KERNEL_OK")
</pallas_src>

<mosaic_0001>
module attributes {stable_mosaic.version = 11 : i64} {
  func.func @_dice_bce_partial_kernel(%arg0: i32, %arg1: i32, %arg2: memref<16x128xf32, #tpu.memory_space<vmem>>, %arg3: memref<16x128xf32, #tpu.memory_space<vmem>>, %arg4: memref<1x3x8x128xf32, #tpu.memory_space<vmem>>, %arg5: memref<8x128xf32, #tpu.memory_space<vmem>>, %arg6: memref<8x128xf32, #tpu.memory_space<vmem>>, %arg7: memref<8x128xf32, #tpu.memory_space<vmem>>) attributes {dimension_semantics = [#tpu.dimension_semantics<parallel>, #tpu.dimension_semantics<arbitrary>], iteration_bounds = array<i64: 1, 1>, scalar_prefetch = 0 : i64, scratch_operands = 3 : i64, tpu.core_type = #tpu.core_type<tc>, window_params = [{transform_indices = @transform_0, window_bounds = array<i64: 16, 128>}, {transform_indices = @transform_1, window_bounds = array<i64: 16, 128>}, {transform_indices = @transform_2, window_bounds = array<i64: 1, 3, 8, 128>}]} {
    %c0_i32 = arith.constant 0 : i32
    %0 = arith.cmpi eq, %arg1, %c0_i32 : i32
    %1 = arith.extui %0 : i1 to i32
    %c0_i32_0 = arith.constant 0 : i32
    %2 = arith.cmpi ne, %1, %c0_i32_0 : i32
    scf.if %2 {
      %cst_24 = arith.constant 0.000000e+00 : f32
      %38 = vector.broadcast %cst_24 : f32 to vector<8x128xf32>
      %c0_25 = arith.constant 0 : index
      %c0_26 = arith.constant 0 : index
      %39 = vector.load %arg5[%c0_25, %c0_26] : memref<8x128xf32, #tpu.memory_space<vmem>>, vector<8x128xf32>
      tpu.vector_store %arg5[%c0_25, %c0_26], %38 {strides = array<i32>} : memref<8x128xf32, #tpu.memory_space<vmem>>, vector<8x128xf32>,
      %cst_27 = arith.constant 0.000000e+00 : f32
      %40 = vector.broadcast %cst_27 : f32 to vector<8x128xf32>
      %c0_28 = arith.constant 0 : index
      %c0_29 = arith.constant 0 : index
      %41 = vector.load %arg6[%c0_28, %c0_29] : memref<8x128xf32, #tpu.memory_space<vmem>>, vector<8x128xf32>
      tpu.vector_store %arg6[%c0_28, %c0_29], %40 {strides = array<i32>} : memref<8x128xf32, #tpu.memory_space<vmem>>, vector<8x128xf32>,
      %cst_30 = arith.constant 0.000000e+00 : f32
      %42 = vector.broadcast %cst_30 : f32 to vector<8x128xf32>
      %c0_31 = arith.constant 0 : index
      %c0_32 = arith.constant 0 : index
      %43 = vector.load %arg7[%c0_31, %c0_32] : memref<8x128xf32, #tpu.memory_space<vmem>>, vector<8x128xf32>
      tpu.vector_store %arg7[%c0_31, %c0_32], %42 {strides = array<i32>} : memref<8x128xf32, #tpu.memory_space<vmem>>, vector<8x128xf32>,
    } else {
    }
    %c0 = arith.constant 0 : index
    %c0_1 = arith.constant 0 : index
    %3 = vector.load %arg2[%c0, %c0_1] : memref<16x128xf32, #tpu.memory_space<vmem>>, vector<16x128xf32>
    %c0_2 = arith.constant 0 : index
    %c0_3 = arith.constant 0 : index
    %4 = vector.load %arg3[%c0_2, %c0_3] : memref<16x128xf32, #tpu.memory_space<vmem>>, vector<16x128xf32>
    %5 = arith.mulf %3, %4 : vector<16x128xf32>
    %6 = arith.addf %3, %4 : vector<16x128xf32>
    %7 = math.log %3 : vector<16x128xf32>
    %cst = arith.constant -1.000000e+02 : f32
    %8 = vector.broadcast %cst : f32 to vector<16x128xf32>
    %9 = arith.maximumf %7, %8 : vector<16x128xf32>
    %cst_4 = arith.constant 1.000000e+00 : f32
    %10 = vector.broadcast %cst_4 : f32 to vector<16x128xf32>
    %11 = arith.subf %10, %3 : vector<16x128xf32>
    %12 = math.log %11 : vector<16x128xf32>
    %cst_5 = arith.constant -1.000000e+02 : f32
    %13 = vector.broadcast %cst_5 : f32 to vector<16x128xf32>
    %14 = arith.maximumf %12, %13 : vector<16x128xf32>
    %15 = arith.subf %9, %14 : vector<16x128xf32>
    %16 = arith.mulf %4, %15 : vector<16x128xf32>
    %17 = arith.addf %14, %16 : vector<16x128xf32>
    %cst_6 = arith.constant 0.000000e+00 : f32
    %18 = vector.broadcast %cst_6 : f32 to vector<16x128xf32>
    %19 = arith.subf %18, %17 : vector<16x128xf32>
    %c0_7 = arith.constant 0 : index
    %c0_8 = arith.constant 0 : index
    %20 = vector.load %arg5[%c0_7, %c0_8] : memref<8x128xf32, #tpu.memory_space<vmem>>, vector<8x128xf32>
    %21 = vector.shape_cast %5 : vector<16x128xf32> to vector<2x8x128xf32>
    %cst_9 = arith.constant dense<0.000000e+00> : vector<8x128xf32>
    %22 = vector.multi_reduction <add>, %21, %cst_9 [0] : vector<2x8x128xf32> to vector<8x128xf32>
    %23 = arith.addf %20, %22 : vector<8x128xf32>
    %c0_10 = arith.constant 0 : index
    %c0_11 = arith.constant 0 : index
    %24 = vector.load %arg5[%c0_10, %c0_11] : memref<8x128xf32, #tpu.memory_space<vmem>>, vector<8x128xf32>
    tpu.vector_store %arg5[%c0_10, %c0_11], %23 {strides = array<i32>} : memref<8x128xf32, #tpu.memory_space<vmem>>, vector<8x128xf32>,
    %c0_12 = arith.constant 0 : index
    %c0_13 = arith.constant 0 : index
    %25 = vector.load %arg6[%c0_12, %c0_13] : memref<8x128xf32, #tpu.memory_space<vmem>>, vector<8x128xf32>
    %26 = vector.shape_cast %6 : vector<16x128xf32> to vector<2x8x128xf32>
    %cst_14 = arith.constant dense<0.000000e+00> : vector<8x128xf32>
    %27 = vector.multi_reduction <add>, %26, %cst_14 [0] : vector<2x8x128xf32> to vector<8x128xf32>
    %28 = arith.addf %25, %27 : vector<8x128xf32>
    %c0_15 = arith.constant 0 : index
    %c0_16 = arith.constant 0 : index
    %29 = vector.load %arg6[%c0_15, %c0_16] : memref<8x128xf32, #tpu.memory_space<vmem>>, vector<8x128xf32>
    tpu.vector_store %arg6[%c0_15, %c0_16], %28 {strides = array<i32>} : memref<8x128xf32, #tpu.memory_space<vmem>>, vector<8x128xf32>,
    %c0_17 = arith.constant 0 : index
    %c0_18 = arith.constant 0 : index
    %30 = vector.load %arg7[%c0_17, %c0_18] : memref<8x128xf32, #tpu.memory_space<vmem>>, vector<8x128xf32>
    %31 = vector.shape_cast %19 : vector<16x128xf32> to vector<2x8x128xf32>
    %cst_19 = arith.constant dense<0.000000e+00> : vector<8x128xf32>
    %32 = vector.multi_reduction <add>, %31, %cst_19 [0] : vector<2x8x128xf32> to vector<8x128xf32>
    %33 = arith.addf %30, %32 : vector<8x128xf32>
    %c0_20 = arith.constant 0 : index
    %c0_21 = arith.constant 0 : index
    %34 = vector.load %arg7[%c0_20, %c0_21] : memref<8x128xf32, #tpu.memory_space<vmem>>, vector<8x128xf32>
    tpu.vector_store %arg7[%c0_20, %c0_21], %33 {strides = array<i32>} : memref<8x128xf32, #tpu.memory_space<vmem>>, vector<8x128xf32>,
    %c0_i32_22 = arith.constant 0 : i32
    %35 = arith.cmpi eq, %arg1, %c0_i32_22 : i32
    %36 = arith.extui %35 : i1 to i32
    %c0_i32_23 = arith.constant 0 : i32
    %37 = arith.cmpi ne, %36, %c0_i32_23 : i32
    scf.if %37 {
      %c0_24 = arith.constant 0 : index
      %c0_25 = arith.constant 0 : index
      %38 = vector.load %arg5[%c0_24, %c0_25] : memref<8x128xf32, #tpu.memory_space<vmem>>, vector<8x128xf32>
      %c0_26 = arith.constant 0 : index
      %c0_27 = arith.constant 0 : index
      %c0_28 = arith.constant 0 : index
      %c0_29 = arith.constant 0 : index
      %39 = vector.load %arg4[%c0_26, %c0_27, %c0_28, %c0_29] : memref<1x3x8x128xf32, #tpu.memory_space<vmem>>, vector<1x1x8x128xf32>
      %40 = vector.shape_cast %39 : vector<1x1x8x128xf32> to vector<8x128xf32>
      %41 = vector.shape_cast %38 : vector<8x128xf32> to vector<1x1x8x128xf32>
      tpu.vector_store %arg4[%c0_26, %c0_27, %c0_28, %c0_29], %41 {strides = array<i32>} : memref<1x3x8x128xf32, #tpu.memory_space<vmem>>, vector<1x1x8x128xf32>,
      %c0_30 = arith.constant 0 : index
      %c0_31 = arith.constant 0 : index
      %42 = vector.load %arg6[%c0_30, %c0_31] : memref<8x128xf32, #tpu.memory_space<vmem>>, vector<8x128xf32>
      %c0_32 = arith.constant 0 : index
      %c1 = arith.constant 1 : index
      %c0_33 = arith.constant 0 : index
      %c0_34 = arith.constant 0 : index
      %43 = vector.load %arg4[%c0_32, %c1, %c0_33, %c0_34] : memref<1x3x8x128xf32, #tpu.memory_space<vmem>>, vector<1x1x8x128xf32>
      %44 = vector.shape_cast %43 : vector<1x1x8x128xf32> to vector<8x128xf32>
      %45 = vector.shape_cast %42 : vector<8x128xf32> to vector<1x1x8x128xf32>
      tpu.vector_store %arg4[%c0_32, %c1, %c0_33, %c0_34], %45 {strides = array<i32>} : memref<1x3x8x128xf32, #tpu.memory_space<vmem>>, vector<1x1x8x128xf32>,
      %c0_35 = arith.constant 0 : index
      %c0_36 = arith.constant 0 : index
      %46 = vector.load %arg7[%c0_35, %c0_36] : memref<8x128xf32, #tpu.memory_space<vmem>>, vector<8x128xf32>
      %c0_37 = arith.constant 0 : index
      %c2 = arith.constant 2 : index
      %c0_38 = arith.constant 0 : index
      %c0_39 = arith.constant 0 : index
      %47 = vector.load %arg4[%c0_37, %c2, %c0_38, %c0_39] : memref<1x3x8x128xf32, #tpu.memory_space<vmem>>, vector<1x1x8x128xf32>
      %48 = vector.shape_cast %47 : vector<1x1x8x128xf32> to vector<8x128xf32>
      %49 = vector.shape_cast %46 : vector<8x128xf32> to vector<1x1x8x128xf32>
      tpu.vector_store %arg4[%c0_37, %c2, %c0_38, %c0_39], %49 {strides = array<i32>} : memref<1x3x8x128xf32, #tpu.memory_space<vmem>>, vector<1x1x8x128xf32>,
    } else {
    }
    return
  }
  func.func @transform_0(%arg0: i32, %arg1: i32) -> (i32, i32) {
    %c1_i32 = arith.constant 1 : i32
    %0 = arith.muli %arg0, %c1_i32 : i32
    %1 = arith.addi %0, %arg1 : i32
    %c0_i32 = arith.constant 0 : i32
    %2 = arith.minsi %1, %c0_i32 : i32
    %c0_i32_0 = arith.constant 0 : i32
    %c0_i32_1 = arith.constant 0 : i32
    return %2, %c0_i32_0 : i32, i32
  }
  func.func @transform_1(%arg0: i32, %arg1: i32) -> (i32, i32) {
    %c1_i32 = arith.constant 1 : i32
    %0 = arith.muli %arg0, %c1_i32 : i32
    %1 = arith.addi %0, %arg1 : i32
    %c0_i32 = arith.constant 0 : i32
    %2 = arith.minsi %1, %c0_i32 : i32
    %c0_i32_0 = arith.constant 0 : i32
    %c0_i32_1 = arith.constant 0 : i32
    return %2, %c0_i32_0 : i32, i32
  }
  func.func @transform_2(%arg0: i32, %arg1: i32) -> (i32, i32, i32, i32) {
    %c0_i32 = arith.constant 0 : i32
    %c0_i32_0 = arith.constant 0 : i32
    %c0_i32_1 = arith.constant 0 : i32
    %c0_i32_2 = arith.constant 0 : i32
    return %arg0, %c0_i32, %c0_i32_0, %c0_i32_1 : i32, i32, i32, i32
  }
}

</mosaic_0001>

<bundles_post_ra>
// kernel: dice_bce_loss.1
= control target key start
LH: loop header
LB: loop body
LE: loop exit
PB: predicated region body
PF: predicated region fallthrough
CT: control target
= control target key end

     0   :  { %s197_s0 = inlined_call_operand.vmem [shape: f32[16,128], index: 0, kind: input, shape index: {}]   ;;  %s198_s1 = inlined_call_operand.vmem [shape: f32[16,128], index: 1, kind: input, shape index: {}]   ;;  %s199_s2 = inlined_call_operand.vmem [shape: f32[1,3,8,128], index: 2, kind: output, shape index: {}]  }
   0x1   :  { %v82_v0 = vld [vmem:[%s197_s0] sm:$0xff]  ;;  %v83_v1 = vld [vmem:[%s197_s0 + $0x8] sm:$0xff] }
   0x2   :  { %v84_v2 = vld [vmem:[%s198_s1] sm:$0xff]  ;;  %v85_v3 = vld [vmem:[%s198_s1 + $0x8] sm:$0xff]  ;;  %153 = vlog2.f32 %v82_v0  ;;  %v96_v6 = vsub.f32 1.0, %v82_v0  ;;  %v97_v9 = vsub.f32 1.0, %v83_v1 }
   0x3   :  { %v86_v4 = vmul.f32 %v84_v2, %v82_v0  ;;  %v88_v5 = vadd.f32 %v84_v2, %v82_v0  ;;  %v87_v7 = vmul.f32 %v85_v3, %v83_v1  ;;  %155 = vlog2.f32 %v83_v1 }
   0x4   :  { %v89_v8 = vadd.f32 %v85_v3, %v83_v1  ;;  %157 = vlog2.f32 %v96_v6 }
   0x5   :  { %v113_v10 = vadd.f32 %v87_v7, %v86_v4  ;;  %159 = vlog2.f32 %v97_v9 }
   0x6   :  { %v117_v11 = vadd.f32 %v89_v8, %v88_v5 }
   0x7   :  { %128 = vst [vmem:[%s199_s2] sm:$0xff] %v113_v10 }
   0x8   :  { %151 = vst [vmem:[%s199_s2 + $0x8] sm:$0xff] %v117_v11 }
   0xf   :  { %v154_v12 = vpop.eup %153 }
  0x10   :  { %v156_v13 = vpop.eup %155  ;;  %v91_v14 = vmul.f32 0.6931472, %v154_v12 }
  0x11   :  { %v158_v15 = vpop.eup %157  ;;  %v93_v16 = vmul.f32 0.6931472, %v156_v13 }
  0x12   :  { %v160_v17 = vpop.eup %159  ;;  %v94_v18 = vmax.f32 %v91_v14, -100.0  ;;  %v99_v19 = vmul.f32 0.6931472, %v158_v15 }
  0x13   :  { %v95_v20 = vmax.f32 %v93_v16, -100.0  ;;  %v101_v21 = vmul.f32 0.6931472, %v160_v17 }
  0x14   :  { %v102_v22 = vmax.f32 %v99_v19, -100.0 }
  0x15   :  { %v103_v23 = vmax.f32 %v101_v21, -100.0 }
  0x16   :  { %v104_v24 = vsub.f32 %v94_v18, %v102_v22 }
  0x17   :  { %v105_v25 = vsub.f32 %v95_v20, %v103_v23 }
  0x18   :  { %v106_v26 = vmul.f32 %v104_v24, %v84_v2 }
  0x19   :  { %v107_v27 = vmul.f32 %v105_v25, %v85_v3 }
  0x1a   :  { %v108_v28 = vadd.f32 %v106_v26, %v102_v22 }
  0x1b   :  { %v109_v29 = vadd.f32 %v107_v27, %v103_v23 }
  0x1c   :  { %v110_v30 = vsub.f32 0.0, %v108_v28 }
  0x1d   :  { %v111_v31 = vsub.f32 0.0, %v109_v29 }
  0x1f   :  { %v121_v32 = vadd.f32 %v111_v31, %v110_v30 }
  0x21   :  { %152 = vst [vmem:[%s199_s2 + $0x10] sm:$0xff] %v121_v32 }

</bundles_post_ra>
